<compile_context>
chip_gen: v7x
topology: tpu7x:2x2x1
jax: 0.10.0
libtpu: 0.0.40
codegen_flags: <defaults>
</compile_context>

<pallas_src>
import functools

import jax
import jax.numpy as jnp
from jax.experimental import pallas as pl
from jax.experimental.pallas import tpu as pltpu


def _round_up(x, m):
    return (x + m - 1) // m * m


def _resfeatnet_kernel(num_layer, hidden_dim,
                       alphas_ref,            # SMEM (num_layer + 1,) f32
                       lf_ref,                # (label_dim + feat_dim, TILE_B)
                       wpre_ref,              # ((L+1)*H, label_dim + feat_dim)
                       bpre_ref,              # ((L+1)*H, 1)  pre-summed biases
                       wblk_ref,              # (L, H, H)
                       wlast_ref, blast_ref,  # (out_dim, H), (out_dim, 1)
                       out_ref):              # (out_dim, TILE_B)
    H = hidden_dim
    wdt = wblk_ref.dtype
    lf = lf_ref[...].astype(wdt)                       # (K_in, TILE_B)

    # One small-K matmul produces layer1's pre-activation AND every layer's
    # (label + feat) contribution; all biases are already folded in.
    contrib = jnp.dot(wpre_ref[...], lf,
                      preferred_element_type=jnp.float32) + bpre_ref[...]

    # layer1 + PReLU: h has shape (H, TILE_B), batch on the lane axis.
    z = contrib[:H, :]
    a0 = alphas_ref[0]
    h = jnp.where(z >= 0.0, z, a0 * z)

    # Residual blocks: each is a single K=H MXU matmul + add + PReLU.
    # (Python unroll is fine for small num_layer; switch to lax.fori_loop with
    #  dynamic wblk_ref[i]/contrib slices if num_layer grows beyond ~4.)
    for layer in range(num_layer):
        lo = (layer + 1) * H
        z = jnp.dot(wblk_ref[layer], h.astype(wdt),
                    preferred_element_type=jnp.float32)
        z = z + contrib[lo:lo + H, :]
        a = alphas_ref[layer + 1]
        h = jnp.where(z >= 0.0, z, a * z)

    # last layer -> lane-dense (out_dim, TILE_B) store.
    out_ref[...] = (
        jnp.dot(wlast_ref[...], h.astype(wdt),
                preferred_element_type=jnp.float32) + blast_ref[...]
    ).astype(out_ref.dtype)


def pack_params(params, *, weight_dtype=jnp.float32):
    """One-time host-side packing of ResFeatNet weights for the fused kernel.

    Stacks [0 | w1] and [w_label[i] | w_res[i]] into a single ((L+1)*H, K_in)
    matrix (K_in = label_emb_dim + feat_dim) and pre-sums all corresponding
    biases.  Use weight_dtype=jnp.bfloat16 on v6e/v7x; keep float32 on v5e.
    """
    L, H, _ = params["w_block"].shape
    label_dim = params["w_label"].shape[2]
    out_dim = params["w_last"].shape[0]
    f32 = jnp.float32

    w1_padded = jnp.concatenate(
        [jnp.zeros((H, label_dim), params["w1"].dtype), params["w1"]], axis=1)
    w_lr = jnp.concatenate([params["w_label"], params["w_res"]], axis=2)
    w_pre = jnp.concatenate([w1_padded[None], w_lr], axis=0)
    w_pre = w_pre.reshape((L + 1) * H, w_pre.shape[-1])

    b_hidden = params["b_block"] + params["b_label"] + params["b_res"]
    b_pre = jnp.concatenate([params["b1"][None], b_hidden], axis=0)
    b_pre = b_pre.reshape((L + 1) * H, 1)

    return {
        "w_pre": w_pre.astype(weight_dtype),
        "b_pre": b_pre.astype(f32),
        "w_block": params["w_block"].astype(weight_dtype),
        "w_last": params["w_last"].astype(weight_dtype),
        "b_last": params["b_last"].reshape(out_dim, 1).astype(f32),
        "alphas": params["alphas"].astype(f32),              # (L + 1,)
    }


@functools.partial(jax.jit, static_argnames=("tile_b",))
def resfeatnet_forward(feat, label, packed, *, tile_b=None):
    """feat: (B, feat_dim), label: (B, label_emb_dim) -> (B, output_dim)."""
    L, H, _ = packed["w_block"].shape
    k_in = packed["w_pre"].shape[1]
    out_dim = packed["w_last"].shape[0]
    B = feat.shape[0]

    if tile_b is None:
        # Big tiles amortize the per-grid-step overhead and widen the MXU N
        # dimension; >=2 steps keeps both v7x TensorCores busy; the 1024 cap
        # keeps activations well inside scoped VMEM (incl. v5e's 16 MiB).
        tile_b = int(min(1024, max(128, _round_up(pl.cdiv(max(B, 1), 2), 128))))

    b_pad = _round_up(max(B, 1), tile_b)
    pad = b_pad - B

    # Single streamed input: [label | feat] transposed, batch on the lane axis.
    act_dtype = packed["w_pre"].dtype
    lf = jnp.concatenate([label, feat], axis=1).astype(act_dtype)   # (B, K_in)
    lf_t = jnp.pad(lf.T, ((0, 0), (0, pad)))                        # (K_in, b_pad)

    grid = (b_pad // tile_b,)
    const2 = lambda i: (0, 0)
    const3 = lambda i: (0, 0, 0)

    in_specs = [
        pl.BlockSpec(memory_space=pltpu.MemorySpace.SMEM),   # alphas (scalars)
        pl.BlockSpec((k_in, tile_b), lambda i: (0, i)),      # lf_t (streamed)
        pl.BlockSpec(((L + 1) * H, k_in), const2),           # w_pre (resident)
        pl.BlockSpec(((L + 1) * H, 1), const2),              # b_pre
        pl.BlockSpec((L, H, H), const3),                      # w_block
        pl.BlockSpec((out_dim, H), const2),                   # w_last
        pl.BlockSpec((out_dim, 1), const2),                   # b_last
    ]
    out_specs = pl.BlockSpec((out_dim, tile_b), lambda i: (0, i))
    out_shape = jax.ShapeDtypeStruct((out_dim, b_pad), jnp.float32)

    operands = (packed["alphas"], lf_t, packed["w_pre"], packed["b_pre"],
                packed["w_block"], packed["w_last"], packed["b_last"])

    flops_per_row = (2 * k_in * (L + 1) * H        # contribution matmul
                     + L * 2 * H * H               # hidden-block matmuls
                     + 2 * H * out_dim             # last layer
                     + 3 * (L + 1) * H)            # PReLU cmp/mul/select
    bytes_accessed = sum(int(a.size) * a.dtype.itemsize for a in operands)
    bytes_accessed += out_dim * b_pad * 4
    cost = pl.CostEstimate(flops=int(flops_per_row) * int(b_pad),
                           transcendentals=0,
                           bytes_accessed=int(bytes_accessed))

    out_t = pl.pallas_call(
        functools.partial(_resfeatnet_kernel, L, H),
        grid=grid,
        in_specs=in_specs,
        out_specs=out_specs,
        out_shape=out_shape,
        compiler_params=pltpu.CompilerParams(
            dimension_semantics=("parallel",)),
        cost_estimate=cost,
    )(*operands)

    return out_t[:, :B].T                                    # (B, out_dim)


def init_params(key, feat_dim=2, label_emb_dim=4, output_dim=1,
                hidden_dim=128, num_layer=1):
    """PyTorch-default-like init: Linear weights/biases uniform(+-1/sqrt(fan_in))
    stored as (out_features, in_features); PReLU weight = 0.25."""
    assert num_layer >= 1

    def linear(k, fan_in, fan_out):
        kw, kb = jax.random.split(k)
        bound = 1.0 / float(fan_in) ** 0.5
        w = jax.random.uniform(kw, (fan_out, fan_in), jnp.float32, -bound, bound)
        b = jax.random.uniform(kb, (fan_out,), jnp.float32, -bound, bound)
        return w, b

    keys = jax.random.split(key, 3 * num_layer + 2)
    w1, b1 = linear(keys[0], feat_dim, hidden_dim)
    wb, bb, wl, bl, wr, br = [], [], [], [], [], []
    for i in range(num_layer):
        w, b = linear(keys[1 + 3 * i], hidden_dim, hidden_dim)
        wb.append(w); bb.append(b)
        w, b = linear(keys[2 + 3 * i], label_emb_dim, hidden_dim)
        wl.append(w); bl.append(b)
        w, b = linear(keys[3 + 3 * i], feat_dim, hidden_dim)
        wr.append(w); br.append(b)
    w_last, b_last = linear(keys[-1], hidden_dim, output_dim)

    return {
        "w1": w1, "b1": b1,
        "w_block": jnp.stack(wb), "b_block": jnp.stack(bb),
        "w_label": jnp.stack(wl), "b_label": jnp.stack(bl),
        "w_res": jnp.stack(wr), "b_res": jnp.stack(br),
        "w_last": w_last, "b_last": b_last,
        "alphas": jnp.full((num_layer + 1,), 0.25, jnp.float32),
    }


def reference_forward(feat, label, p):
    """Pure-JAX mirror of ResFeatNet.forward."""
    x = feat @ p["w1"].T + p["b1"]
    a = p["alphas"][0]
    x = jnp.where(x >= 0.0, x, a * x)
    L = p["w_block"].shape[0]
    for i in range(L):
        z = (x @ p["w_block"][i].T + p["b_block"][i]
             + label @ p["w_label"][i].T + p["b_label"][i]
             + feat @ p["w_res"][i].T + p["b_res"][i])
        a = p["alphas"][i + 1]
        x = jnp.where(z >= 0.0, z, a * z)
    return x @ p["w_last"].T + p["b_last"]


if __name__ == "__main__":
    # Small, TPU-aligned shapes consistent with ResFeatNet(feat_dim=2,
    # label_emb_dim=4, output_dim=1): hidden_dim=128, num_layer=2, batch=256.
    B, FEAT_DIM, LABEL_DIM = 256, 2, 4
    HIDDEN_DIM, NUM_LAYER, OUT_DIM = 128, 2, 1

    key = jax.random.PRNGKey(0)
    k_feat, k_lab, k_params = jax.random.split(key, 3)

    feat = jax.random.normal(k_feat, (B, FEAT_DIM), jnp.float32)
    label = jax.random.normal(k_lab, (B, LABEL_DIM), jnp.float32)

    params = init_params(k_params, FEAT_DIM, LABEL_DIM, OUT_DIM,
                         HIDDEN_DIM, NUM_LAYER)
    packed = pack_params(params)       # f32 weights -> exact check vs reference

    out = resfeatnet_forward(feat, label, packed)
    out = jax.block_until_ready(out)

    ref = reference_forward(feat, label, params)
    assert out.shape == (B, OUT_DIM), out.shape
    assert jnp.all(jnp.isfinite(out)), "non-finite output"
    assert jnp.allclose(out, ref, atol=5e-4, rtol=5e-4), "mismatch vs reference"

    print("KERNEL_OK")
</pallas_src>

<mosaic_0001>
module attributes {stable_mosaic.version = 11 : i64} {
  func.func @_resfeatnet_kernel(%arg0: i32, %arg1: memref<3xf32, #tpu.memory_space<smem>>, %arg2: memref<6x128xf32, #tpu.memory_space<vmem>>, %arg3: memref<384x6xf32, #tpu.memory_space<vmem>>, %arg4: memref<384x1xf32, #tpu.memory_space<vmem>>, %arg5: memref<2x128x128xf32, #tpu.memory_space<vmem>>, %arg6: memref<1x128xf32, #tpu.memory_space<vmem>>, %arg7: memref<1x1xf32, #tpu.memory_space<vmem>>, %arg8: memref<1x128xf32, #tpu.memory_space<vmem>>) attributes {dimension_semantics = [#tpu.dimension_semantics<parallel>], iteration_bounds = array<i64: 2>, scalar_prefetch = 0 : i64, scratch_operands = 0 : i64, tpu.core_type = #tpu.core_type<tc>, window_params = [{transform_indices = @transform_0, window_bounds = array<i64: 3>}, {transform_indices = @transform_1, window_bounds = array<i64: 6, 128>}, {pipeline_mode = #tpu.pipeline_mode<synchronous>, transform_indices = @transform_2, window_bounds = array<i64: 384, 6>}, {pipeline_mode = #tpu.pipeline_mode<synchronous>, transform_indices = @transform_3, window_bounds = array<i64: 384, 1>}, {pipeline_mode = #tpu.pipeline_mode<synchronous>, transform_indices = @transform_4, window_bounds = array<i64: 2, 128, 128>}, {pipeline_mode = #tpu.pipeline_mode<synchronous>, transform_indices = @transform_5, window_bounds = array<i64: 1, 128>}, {pipeline_mode = #tpu.pipeline_mode<synchronous>, transform_indices = @transform_6, window_bounds = array<i64: 1, 1>}, {transform_indices = @transform_7, window_bounds = array<i64: 1, 128>}]} {
    %c0 = arith.constant 0 : index
    %c0_0 = arith.constant 0 : index
    %0 = vector.load %arg2[%c0, %c0_0] : memref<6x128xf32, #tpu.memory_space<vmem>>, vector<6x128xf32>
    %c0_1 = arith.constant 0 : index
    %c0_2 = arith.constant 0 : index
    %1 = vector.load %arg3[%c0_1, %c0_2] : memref<384x6xf32, #tpu.memory_space<vmem>>, vector<384x6xf32>
    %cst = arith.constant dense<0.000000e+00> : vector<384x128xf32>
    %2 = tpu.matmul %1, %0, %cst {dimension_numbers = #tpu.dot_dimension_numbers<[1], [0], [0], [1], [0, 0, 1, 1], [], []>} : vector<384x6xf32>, vector<6x128xf32>, vector<384x128xf32> -> vector<384x128xf32>
    %c0_3 = arith.constant 0 : index
    %c0_4 = arith.constant 0 : index
    %3 = vector.load %arg4[%c0_3, %c0_4] : memref<384x1xf32, #tpu.memory_space<vmem>>, vector<384x1xf32>
    %4 = vector.broadcast %3 : vector<384x1xf32> to vector<384x128xf32>
    %5 = arith.addf %2, %4 : vector<384x128xf32>
    %6 = vector.extract_strided_slice %5 {offsets = [0, 0], sizes = [128, 128], strides = [1, 1]} : vector<384x128xf32> to vector<128x128xf32>
    %c0_5 = arith.constant 0 : index
    %7 = memref.load %arg1[%c0_5] : memref<3xf32, #tpu.memory_space<smem>>
    %cst_6 = arith.constant 0.000000e+00 : f32
    %8 = vector.broadcast %cst_6 : f32 to vector<128x128xf32>
    %9 = arith.cmpf oge, %6, %8 : vector<128x128xf32>
    %10 = vector.broadcast %7 : f32 to vector<128x128xf32>
    %11 = arith.mulf %10, %6 : vector<128x128xf32>
    %12 = arith.select %9, %6, %11 : vector<128x128xi1>, vector<128x128xf32>
    %c0_7 = arith.constant 0 : index
    %c0_8 = arith.constant 0 : index
    %c0_9 = arith.constant 0 : index
    %13 = vector.load %arg5[%c0_7, %c0_8, %c0_9] : memref<2x128x128xf32, #tpu.memory_space<vmem>>, vector<1x128x128xf32>
    %14 = vector.shape_cast %13 : vector<1x128x128xf32> to vector<128x128xf32>
    %cst_10 = arith.constant dense<0.000000e+00> : vector<128x128xf32>
    %15 = tpu.matmul %14, %12, %cst_10 {dimension_numbers = #tpu.dot_dimension_numbers<[1], [0], [0], [1], [0, 0, 1, 1], [], []>} : vector<128x128xf32>, vector<128x128xf32>, vector<128x128xf32> -> vector<128x128xf32>
    %16 = vector.extract_strided_slice %5 {offsets = [128, 0], sizes = [128, 128], strides = [1, 1]} : vector<384x128xf32> to vector<128x128xf32>
    %17 = arith.addf %15, %16 : vector<128x128xf32>
    %c1 = arith.constant 1 : index
    %18 = memref.load %arg1[%c1] : memref<3xf32, #tpu.memory_space<smem>>
    %cst_11 = arith.constant 0.000000e+00 : f32
    %19 = vector.broadcast %cst_11 : f32 to vector<128x128xf32>
    %20 = arith.cmpf oge, %17, %19 : vector<128x128xf32>
    %21 = vector.broadcast %18 : f32 to vector<128x128xf32>
    %22 = arith.mulf %21, %17 : vector<128x128xf32>
    %23 = arith.select %20, %17, %22 : vector<128x128xi1>, vector<128x128xf32>
    %c1_12 = arith.constant 1 : index
    %c0_13 = arith.constant 0 : index
    %c0_14 = arith.constant 0 : index
    %24 = vector.load %arg5[%c1_12, %c0_13, %c0_14] : memref<2x128x128xf32, #tpu.memory_space<vmem>>, vector<1x128x128xf32>
    %25 = vector.shape_cast %24 : vector<1x128x128xf32> to vector<128x128xf32>
    %cst_15 = arith.constant dense<0.000000e+00> : vector<128x128xf32>
    %26 = tpu.matmul %25, %23, %cst_15 {dimension_numbers = #tpu.dot_dimension_numbers<[1], [0], [0], [1], [0, 0, 1, 1], [], []>} : vector<128x128xf32>, vector<128x128xf32>, vector<128x128xf32> -> vector<128x128xf32>
    %27 = vector.extract_strided_slice %5 {offsets = [256, 0], sizes = [128, 128], strides = [1, 1]} : vector<384x128xf32> to vector<128x128xf32>
    %28 = arith.addf %26, %27 : vector<128x128xf32>
    %c2 = arith.constant 2 : index
    %29 = memref.load %arg1[%c2] : memref<3xf32, #tpu.memory_space<smem>>
    %cst_16 = arith.constant 0.000000e+00 : f32
    %30 = vector.broadcast %cst_16 : f32 to vector<128x128xf32>
    %31 = arith.cmpf oge, %28, %30 : vector<128x128xf32>
    %32 = vector.broadcast %29 : f32 to vector<128x128xf32>
    %33 = arith.mulf %32, %28 : vector<128x128xf32>
    %34 = arith.select %31, %28, %33 : vector<128x128xi1>, vector<128x128xf32>
    %c0_17 = arith.constant 0 : index
    %c0_18 = arith.constant 0 : index
    %35 = vector.load %arg6[%c0_17, %c0_18] : memref<1x128xf32, #tpu.memory_space<vmem>>, vector<1x128xf32>
    %cst_19 = arith.constant dense<0.000000e+00> : vector<1x128xf32>
    %36 = tpu.matmul %35, %34, %cst_19 {dimension_numbers = #tpu.dot_dimension_numbers<[1], [0], [0], [1], [0, 0, 1, 1], [], []>} : vector<1x128xf32>, vector<128x128xf32>, vector<1x128xf32> -> vector<1x128xf32>
    %c0_20 = arith.constant 0 : index
    %c0_21 = arith.constant 0 : index
    %37 = vector.load %arg7[%c0_20, %c0_21] : memref<1x1xf32, #tpu.memory_space<vmem>>, vector<1x1xf32>
    %38 = vector.broadcast %37 : vector<1x1xf32> to vector<1x128xf32>
    %39 = arith.addf %36, %38 : vector<1x128xf32>
    %c0_22 = arith.constant 0 : index
    %c0_23 = arith.constant 0 : index
    %40 = vector.load %arg8[%c0_22, %c0_23] : memref<1x128xf32, #tpu.memory_space<vmem>>, vector<1x128xf32>
    tpu.vector_store %arg8[%c0_22, %c0_23], %39 {strides = array<i32>} : memref<1x128xf32, #tpu.memory_space<vmem>>, vector<1x128xf32>,
    return
  }
  func.func @transform_0(%arg0: i32) -> i32 {
    %c0_i32 = arith.constant 0 : i32
    %c0_i32_0 = arith.constant 0 : i32
    return %c0_i32 : i32
  }
  func.func @transform_1(%arg0: i32) -> (i32, i32) {
    %c0_i32 = arith.constant 0 : i32
    %c0_i32_0 = arith.constant 0 : i32
    return %c0_i32, %arg0 : i32, i32
  }
  func.func @transform_2(%arg0: i32) -> (i32, i32) {
    %c0_i32 = arith.constant 0 : i32
    %c0_i32_0 = arith.constant 0 : i32
    %c0_i32_1 = arith.constant 0 : i32
    return %c0_i32, %c0_i32_0 : i32, i32
  }
  func.func @transform_3(%arg0: i32) -> (i32, i32) {
    %c0_i32 = arith.constant 0 : i32
    %c0_i32_0 = arith.constant 0 : i32
    %c0_i32_1 = arith.constant 0 : i32
    return %c0_i32, %c0_i32_0 : i32, i32
  }
  func.func @transform_4(%arg0: i32) -> (i32, i32, i32) {
    %c0_i32 = arith.constant 0 : i32
    %c0_i32_0 = arith.constant 0 : i32
    %c0_i32_1 = arith.constant 0 : i32
    %c0_i32_2 = arith.constant 0 : i32
    return %c0_i32, %c0_i32_0, %c0_i32_1 : i32, i32, i32
  }
  func.func @transform_5(%arg0: i32) -> (i32, i32) {
    %c0_i32 = arith.constant 0 : i32
    %c0_i32_0 = arith.constant 0 : i32
    %c0_i32_1 = arith.constant 0 : i32
    return %c0_i32, %c0_i32_0 : i32, i32
  }
  func.func @transform_6(%arg0: i32) -> (i32, i32) {
    %c0_i32 = arith.constant 0 : i32
    %c0_i32_0 = arith.constant 0 : i32
    %c0_i32_1 = arith.constant 0 : i32
    return %c0_i32, %c0_i32_0 : i32, i32
  }
  func.func @transform_7(%arg0: i32) -> (i32, i32) {
    %c0_i32 = arith.constant 0 : i32
    %c0_i32_0 = arith.constant 0 : i32
    return %c0_i32, %arg0 : i32, i32
  }
}

</mosaic_0001>

<bundles_post_ra>
// kernel: resfeatnet_forward.1
= control target key start
LH: loop header
LB: loop body
LE: loop exit
PB: predicated region body
PF: predicated region fallthrough
CT: control target
= control target key end

     0   :  { %s3196_s0 = inlined_call_operand.vmem [shape: f32[3], index: 0, kind: input, shape index: {}]   ;;  %s3197_s1 = inlined_call_operand.vmem [shape: f32[6,256], index: 1, kind: input, shape index: {}]   ;;  %s3198_s2 = inlined_call_operand.vmem [shape: f32[384,6], index: 2, kind: input, shape index: {}]   ;;  %s3199_s3 = inlined_call_operand.vmem [shape: f32[384,1], index: 3, kind: input, shape index: {}]   ;;  %s3200_s4 = inlined_call_operand.vmem [shape: f32[2,128,128], index: 4, kind: input, shape index: {}]   ;;  %s3201_s5 = inlined_call_operand.vmem [shape: f32[1,128], index: 5, kind: input, shape index: {}]   ;;  %s3202_s6 = inlined_call_operand.<no memory space> [shape: f32[1,1], index: 6, kind: input, shape index: {}]   ;;  %s3203_s7 = inlined_call_operand.hbm [shape: f32[1,256], index: 7, kind: output, shape index: {}]  }
   0x1   :  { %v12_v0 = vstv %s3202_s6 }
   0x2   :  { %13 = vst [vmem:[#allocation2] sm:$0x1] %v12_v0 }
   0x3   :  { %14 = vsyncpa [#allocation5], 0 }
   0x4   :  { %15 = vsyncpa [#allocation4], 0 }
   0x5   :  { %17 = vsyncpa [#allocation4 + $0x1], 0  ;;  %s2485_s26 = smov 0   ;;  %s2487_s27 = smov 0  }
   0x6   :  { %s2489_s28 = smov 0   ;;  %s2491_s29 = smov 0  }
   0x7 LB: > { %s2506_s6 = sadd.s32 4294967295, %s2434_s29   ;;  %s1715_s30 = sadd.s32 4294967294, %s2434_s29   ;;  %s2434_s29 = sphi %s2491_s29, %s3210_s29   ;;  %s2430_s28 = sphi %s2489_s28, %s3209_s28   ;;  %s2426_s27 = sphi %s2487_s27, %s3208_s27   ;;  %s2422_s26 = sphi %s2485_s26, %s3207_s26  }
   0x8   : > { %s2510_s8 = sadd.s32 1, %s2434_s29   ;;  %s182_s9 = sadd.s32 1, %s2430_s28 }
   0x9   : > { %s179_s10 = ssub.s32 %s2434_s29, %s2510_s8  ;;  %p192_p0 = scmp.ne.s32.totalorder %s2430_s28, %s2426_s27 }
   0xa   : > { %p180_p1 = scmp.eq.s32.totalorder %s179_s10, 0  ;;  %p193_p2 = scmp.eq.s32.totalorder %s2506_s6, 1 }
   0xb   : > { %p198_p3 = scmp.ne.s32.totalorder %s2426_s27, %s2422_s26  ;;  %p199_p4 = scmp.eq.s32.totalorder %s1715_s30, 1 }
   0xc   : > { %s2521_s11 = scalar_select %p180_p1, %s2430_s28, %s182_s9  }
   0xd   : > { %p2523_p5 = por %p193_p2, %p192_p0  ;;  %p2527_p6 = por %p199_p4, %p198_p3 }
   0xe   : > { %p1716_p7 = scmp.ge.s32.totalorder %s2434_s29, 1  ;;  %p206_p8 = scmp.lt.s32.totalorder %s2434_s29, 3 }
   0xf   : > { %p2311_p9 = scmp.eq.s32.totalorder %s2506_s6, 0  ;;  %s219_s17 = sshll.u32 %s3196_s0, 4  ;;  %s220_s17 = int_to_ptr.vmem [resolvable:$true] %s219_s17 }
  0x10   : > { %p2534_p10 = pnand %p1716_p7, %p206_p8  ;;  %s2353_s18 = scalar_lea.vmem %s220_s17, 16 }
  0x11   : > { %p2354_p13 = scmp.ne.s32.totalorder %s220_s17, %s2353_s18  ;;  %p2361_p3 = scmp.lt.s32.totalorder %s220_s17, %s220_s17 }
  0x12   : > { %p2303_p11 = pneg %p2534_p10  ;;  %p2362_p4 = scmp.lt.s32.totalorder %s2353_s18, %s2353_s18 }
  0x14   : > { %p2304_p12 = pnand %p2311_p9, %p2303_p11  ;;  %p2363_p7 = por %p2362_p4, %p2361_p3 }
  0x16   : > { %p2355_p0 = pneg %p2304_p12 }
  0x18   : > { %p2356_p1 = pnand %p2355_p0, %p2354_p13 }
  0x1a   : > { %p2357_p2 = pneg %p2356_p1 }
  0x1c   : > { %p2364_p8 = pnand %p2363_p7, %p2357_p2 }
  0x1e   : > { %2367 = shalt.err (!%p2364_p8)
}
  0x1f   : > { %s2436_s19 = smov [#allocation3]   ;;  %254 = sbr.rel (%p2534_p10) target bundleno = 1033 (0x409), region = 48 }
  0x20   : > { %2306 = dma.vmem_to_smem (!%p2304_p12), %s220_s17, 16, %s2436_s19, [#allocation5]  }
  0x26   : > { %2413 = dma.done.wait (%p2311_p9), [#allocation5], 16  }
  0x27   : > { %2415 = vsyncadd (%p2311_p9), [#allocation5], 4294967280 }
  0x28   : > { %260 = sfence }
  0x29   : > { %v340_v1 = vld [vmem:[%s3199_s3 + $0x10] sm:$0xff]  ;;  %v338_v2 = vld [vmem:[%s3199_s3] sm:$0xff]  ;;  %p285_p11 = scmp.lt.s32.totalorder %s2506_s6, 1  ;;  %v2437_v3 = vmov 0   ;;  %vm626_vm0 = vcmask 48128   ;;  %v341_v6 = vld [vmem:[%s3199_s3 + $0x18] sm:$0xff] }
  0x2a   : > { %2352 = vset.pattern.permute.xlu1 %v2437_v3  ;;  %2351 = vset.pattern.permute.xlu0 %v2437_v3  ;;  %v290_v4 = vld [vmem:[%s3198_s2] sm:$0xff]  ;;  %v339_v7 = vld [vmem:[%s3199_s3 + $0x8] sm:$0xff]  ;;  %vm771_vm1 = vcmask 1045504   ;;  %v292_v13 = vld [vmem:[%s3198_s2 + $0x10] sm:$0xff]  ;;  %s1080_s24 = sld [smem:[#allocation3]]  ;;  %s1771_s9 = sld [smem:[#allocation3 + $0x1]] }
  0x2b   : > { %v306_v5 = vld [vmem:[%s3198_s2 + $0x80] sm:$0xff]  ;;  %398 = vperm.xlu1 %2352, %v340_v1   ;;  %388 = vperm.xlu0 %2351, %v338_v2   ;;  %s286_s10 = scalar_select %p285_p11, %s2506_s6, 1  ;;  %v291_v9 = vld [vmem:[%s3198_s2 + $0x8] sm:$0xff]  ;;  %v308_v14 = vld [vmem:[%s3198_s2 + $0x90] sm:$0xff] }
  0x2c   : > { %1924 = vmatprep.mubr.msk.f32.mxu0 %vm626_vm0, %v290_v4  ;;  %1948 = vmatprep.mubr.msk.f32.mxu1 %vm626_vm0, %v306_v5  ;;  %v307_v10 = vld [vmem:[%s3198_s2 + $0x88] sm:$0xff]  ;;  %v342_v12 = vld [vmem:[%s3199_s3 + $0x20] sm:$0xff]  ;;  %v293_v15 = vld [vmem:[%s3198_s2 + $0x18] sm:$0xff]  ;;  %s283_s16 = sand.u32 1, %s2426_s27   ;;  %s1789_s17 = sshll.u32 %s2506_s6, 4 }
  0x2d   : > { %s1721_s18 = sshll.u32 %s286_s10, 3  ;;  %v343_v11 = vld [vmem:[%s3199_s3 + $0x28] sm:$0xff]  ;;  %v309_v16 = vld [vmem:[%s3198_s2 + $0x98] sm:$0xff]  ;;  %v344_v18 = vld [vmem:[%s3199_s3 + $0x30] sm:$0xff]  ;;  %s1788_s10 = sld [smem:[#allocation3 + $0x2]] }
  0x2e   : > { %s288_s21 = scalar_lea.vmem %s3197_s1, %s1721_s18  ;;  %v345_v17 = vld [vmem:[%s3199_s3 + $0x38] sm:$0xff]  ;;  %v294_v19 = vld [vmem:[%s3198_s2 + $0x20] sm:$0xff]  ;;  %v295_v21 = vld [vmem:[%s3198_s2 + $0x28] sm:$0xff]  ;;  %s284_s18 = scalar_lea.vmem [#allocation6], %s283_s16 }
  0x2f   : > { %403 = vperm.xlu1 %2352, %v341_v6   ;;  %393 = vperm.xlu0 %2351, %v339_v7   ;;  %v289_v8 = vld [vmem:[%s288_s21] sm:$0x3f]  ;;  %v311_v22 = vld [vmem:[%s3198_s2 + $0xa8] sm:$0xff]  ;;  %v296_v25 = vld [vmem:[%s3198_s2 + $0x30] sm:$0xff]  ;;  %s1648_s19 = sshll.u32 %s284_s18, 4  ;;  %s3154_s22 = scalar_lea.hbm %s3203_s7, %s1789_s17  ;;  %s3156_s19 = int_to_ptr.vmem [resolvable:$true] %s1648_s19 }
  0x30   : > { %1922 = vmatprep.subr.msk.mxu0 %vm771_vm1, %v289_v8  ;;  %2231 = vmatprep.subr.msk.mxu1 %vm771_vm1, %v289_v8  ;;  %v310_v20 = vld [vmem:[%s3198_s2 + $0xa0] sm:$0xff]  ;;  %v347_v23 = vld [vmem:[%s3199_s3 + $0x48] sm:$0xff]  ;;  %v312_v26 = vld [vmem:[%s3198_s2 + $0xb0] sm:$0xff]  ;;  %s1636_s23 = scalar_lea.sflag [#allocation4], %s283_s16  ;;  %s2441_s6 = smov [#allocation6]  }
  0x31   : > { %1923 = vmatpush3.msk.msra.mxu0 %vm771_vm1, %v289_v8  ;;  %2232 = vmatpush3.msk.msra.mxu1 %vm771_vm1, %v289_v8  ;;  %v346_v24 = vld [vmem:[%s3199_s3 + $0x40] sm:$0xff]  ;;  %v297_v27 = vld [vmem:[%s3198_s2 + $0x38] sm:$0xff]  ;;  %v348_v30 = vld [vmem:[%s3199_s3 + $0x50] sm:$0xff]  ;;  %s2372_s25 = sshll.u32 %s2441_s6, 4  ;;  %s2373_s25 = int_to_ptr.vmem [resolvable:$false] %s2372_s25 }
  0x32   : > { %1925 = vmatmul.mubr.msk.f32.vlgmr.msra.gmra.mrb[0].mxu0 %vm626_vm0, %v291_v9  ;;  %1949 = vmatmul.mubr.msk.f32.vlgmr.msra.gmra.mrb[0].mxu1 %vm626_vm0, %v307_v10  ;;  %v313_v28 = vld [vmem:[%s3198_s2 + $0xb8] sm:$0xff]  ;;  %v298_v31 = vld [vmem:[%s3198_s2 + $0x40] sm:$0xff]  ;;  %v299_v33 = vld [vmem:[%s3198_s2 + $0x48] sm:$0xff]  ;;  %s2374_s30 = scalar_lea.vmem %s2373_s25, 32  ;;  %p2375_p13 = scmp.lt.s32.totalorder %s3156_s19, %s2373_s25 }
  0x33   : > { %413 = vperm.xlu1 %2352, %v343_v11   ;;  %408 = vperm.xlu0 %2351, %v342_v12   ;;  %v349_v29 = vld [vmem:[%s3199_s3 + $0x58] sm:$0xff]  ;;  %v314_v32 = vld [vmem:[%s3198_s2 + $0xc0] sm:$0xff]  ;;  %v315_v34 = vld [vmem:[%s3198_s2 + $0xc8] sm:$0xff] }
  0x34   : > { %1927 = vmatprep.mubr.msk.f32.mxu0 %vm626_vm0, %v292_v13  ;;  %1951 = vmatprep.mubr.msk.f32.mxu1 %vm626_vm0, %v308_v14  ;;  %v351_v35 = vld [vmem:[%s3199_s3 + $0x68] sm:$0xff]  ;;  %v350_v36 = vld [vmem:[%s3199_s3 + $0x60] sm:$0xff]  ;;  %v300_v37 = vld [vmem:[%s3198_s2 + $0x50] sm:$0xff] }
  0x35   : > { %v316_v38 = vld [vmem:[%s3198_s2 + $0xd0] sm:$0xff]  ;;  %v301_v39 = vld [vmem:[%s3198_s2 + $0x58] sm:$0xff]  ;;  %v302_v43 = vld [vmem:[%s3198_s2 + $0x60] sm:$0xff] }
  0x36   : > { %1928 = vmatmul.mubr.msk.f32.gmra.mrb[2].mxu0 %vm626_vm0, %v293_v15  ;;  %1952 = vmatmul.mubr.msk.f32.gmra.mrb[2].mxu1 %vm626_vm0, %v309_v16  ;;  %v317_v40 = vld [vmem:[%s3198_s2 + $0xd8] sm:$0xff]  ;;  %v352_v42 = vld [vmem:[%s3199_s3 + $0x70] sm:$0xff]  ;;  %v318_v44 = vld [vmem:[%s3198_s2 + $0xe0] sm:$0xff] }
  0x37   : > { %423 = vperm.xlu1 %2352, %v345_v17   ;;  %418 = vperm.xlu0 %2351, %v344_v18   ;;  %v353_v41 = vld [vmem:[%s3199_s3 + $0x78] sm:$0xff]  ;;  %v303_v45 = vld [vmem:[%s3198_s2 + $0x68] sm:$0xff]  ;;  %v354_v48 = vld [vmem:[%s3199_s3 + $0x80] sm:$0xff] }
  0x38   : > { %1930 = vmatprep.mubr.msk.f32.mxu0 %vm626_vm0, %v294_v19  ;;  %1954 = vmatprep.mubr.msk.f32.mxu1 %vm626_vm0, %v310_v20  ;;  %v319_v46 = vld [vmem:[%s3198_s2 + $0xe8] sm:$0xff]  ;;  %v304_v49 = vld [vmem:[%s3198_s2 + $0x70] sm:$0xff]  ;;  %v305_v51 = vld [vmem:[%s3198_s2 + $0x78] sm:$0xff] }
  0x39   : > { %v355_v47 = vld [vmem:[%s3199_s3 + $0x88] sm:$0xff]  ;;  %v320_v50 = vld [vmem:[%s3198_s2 + $0xf0] sm:$0xff]  ;;  %v321_v52 = vld [vmem:[%s3198_s2 + $0xf8] sm:$0xff] }
  0x3a   : > { %1931 = vmatmul.mubr.msk.f32.gmra.mrb[4].mxu0 %vm626_vm0, %v295_v21  ;;  %1955 = vmatmul.mubr.msk.f32.gmra.mrb[4].mxu1 %vm626_vm0, %v311_v22  ;;  %v357_v53 = vld [vmem:[%s3199_s3 + $0x98] sm:$0xff]  ;;  %v356_v54 = vld [vmem:[%s3199_s3 + $0x90] sm:$0xff]  ;;  %v322_v55 = vld [vmem:[%s3198_s2 + $0x100] sm:$0xff] }
  0x3b   : > { %433 = vperm.xlu1 %2352, %v347_v23   ;;  %428 = vperm.xlu0 %2351, %v346_v24   ;;  %v323_v56 = vld [vmem:[%s3198_s2 + $0x108] sm:$0xff]  ;;  %v358_v58 = vld [vmem:[%s3199_s3 + $0xa0] sm:$0xff]  ;;  %v324_v59 = vld [vmem:[%s3198_s2 + $0x110] sm:$0xff] }
  0x3c   : > { %1933 = vmatprep.mubr.msk.f32.mxu0 %vm626_vm0, %v296_v25  ;;  %1957 = vmatprep.mubr.msk.f32.mxu1 %vm626_vm0, %v312_v26  ;;  %v359_v57 = vld [vmem:[%s3199_s3 + $0xa8] sm:$0xff]  ;;  %v325_v60 = vld [vmem:[%s3198_s2 + $0x118] sm:$0xff]  ;;  %v360_v62 = vld [vmem:[%s3199_s3 + $0xb0] sm:$0xff] }
  0x3d   : > { %v361_v61 = vld [vmem:[%s3199_s3 + $0xb8] sm:$0xff]  ;;  %v326_v63 = vld [vmem:[%s3198_s2 + $0x120] sm:$0xff]  ;;  %v327_v0 = vld [vmem:[%s3198_s2 + $0x128] sm:$0xff] }
  0x3e   : > { %1934 = vmatmul.mubr.msk.f32.gmra.mrb[6].mxu0 %vm626_vm0, %v297_v27  ;;  %1958 = vmatmul.mubr.msk.f32.gmra.mrb[6].mxu1 %vm626_vm0, %v313_v28  ;;  %v363_v1 = vld [vmem:[%s3199_s3 + $0xc8] sm:$0xff]  ;;  %v362_v2 = vld [vmem:[%s3199_s3 + $0xc0] sm:$0xff]  ;;  %v328_v3 = vld [vmem:[%s3198_s2 + $0x130] sm:$0xff] }
  0x3f   : > { %443 = vperm.xlu1 %2352, %v349_v29   ;;  %438 = vperm.xlu0 %2351, %v348_v30   ;;  %v329_v4 = vld [vmem:[%s3198_s2 + $0x138] sm:$0xff]  ;;  %v364_v6 = vld [vmem:[%s3199_s3 + $0xd0] sm:$0xff]  ;;  %v330_v7 = vld [vmem:[%s3198_s2 + $0x140] sm:$0xff] }
  0x40   : > { %1936 = vmatprep.mubr.msk.f32.mxu0 %vm626_vm0, %v298_v31  ;;  %1960 = vmatprep.mubr.msk.f32.mxu1 %vm626_vm0, %v314_v32  ;;  %v365_v5 = vld [vmem:[%s3199_s3 + $0xd8] sm:$0xff]  ;;  %v331_v8 = vld [vmem:[%s3198_s2 + $0x148] sm:$0xff]  ;;  %v366_v10 = vld [vmem:[%s3199_s3 + $0xe0] sm:$0xff] }
  0x41   : > { %v367_v9 = vld [vmem:[%s3199_s3 + $0xe8] sm:$0xff]  ;;  %v332_v11 = vld [vmem:[%s3198_s2 + $0x150] sm:$0xff]  ;;  %v333_v12 = vld [vmem:[%s3198_s2 + $0x158] sm:$0xff] }
  0x42   : > { %1937 = vmatmul.mubr.msk.f32.gmra.mrb[8].mxu0 %vm626_vm0, %v299_v33  ;;  %1961 = vmatmul.mubr.msk.f32.gmra.mrb[8].mxu1 %vm626_vm0, %v315_v34  ;;  %v369_v13 = vld [vmem:[%s3199_s3 + $0xf8] sm:$0xff]  ;;  %v368_v14 = vld [vmem:[%s3199_s3 + $0xf0] sm:$0xff]  ;;  %v334_v15 = vld [vmem:[%s3198_s2 + $0x160] sm:$0xff] }
  0x43   : > { %453 = vperm.xlu1 %2352, %v351_v35   ;;  %448 = vperm.xlu0 %2351, %v350_v36   ;;  %v335_v16 = vld [vmem:[%s3198_s2 + $0x168] sm:$0xff]  ;;  %v370_v18 = vld [vmem:[%s3199_s3 + $0x100] sm:$0xff]  ;;  %v336_v19 = vld [vmem:[%s3198_s2 + $0x170] sm:$0xff] }
  0x44   : > { %1939 = vmatprep.mubr.msk.f32.mxu0 %vm626_vm0, %v300_v37  ;;  %1963 = vmatprep.mubr.msk.f32.mxu1 %vm626_vm0, %v316_v38  ;;  %v371_v17 = vld [vmem:[%s3199_s3 + $0x108] sm:$0xff]  ;;  %v337_v20 = vld [vmem:[%s3198_s2 + $0x178] sm:$0xff]  ;;  %v372_v22 = vld [vmem:[%s3199_s3 + $0x110] sm:$0xff] }
  0x45   : > { %v373_v21 = vld [vmem:[%s3199_s3 + $0x118] sm:$0xff]  ;;  %v375_v23 = vld [vmem:[%s3199_s3 + $0x128] sm:$0xff]  ;;  %v374_v24 = vld [vmem:[%s3199_s3 + $0x120] sm:$0xff] }
  0x46   : > { %1940 = vmatmul.mubr.msk.f32.gmra.mrb[10].mxu0 %vm626_vm0, %v301_v39  ;;  %1964 = vmatmul.mubr.msk.f32.gmra.mrb[10].mxu1 %vm626_vm0, %v317_v40  ;;  %v377_v25 = vld [vmem:[%s3199_s3 + $0x138] sm:$0xff]  ;;  %v376_v26 = vld [vmem:[%s3199_s3 + $0x130] sm:$0xff]  ;;  %v379_v27 = vld [vmem:[%s3199_s3 + $0x148] sm:$0xff] }
  0x47   : > { %463 = vperm.xlu1 %2352, %v353_v41   ;;  %458 = vperm.xlu0 %2351, %v352_v42   ;;  %v378_v28 = vld [vmem:[%s3199_s3 + $0x140] sm:$0xff]  ;;  %v381_v29 = vld [vmem:[%s3199_s3 + $0x158] sm:$0xff]  ;;  %v380_v30 = vld [vmem:[%s3199_s3 + $0x150] sm:$0xff] }
  0x48   : > { %1942 = vmatprep.mubr.msk.f32.mxu0 %vm626_vm0, %v302_v43  ;;  %1966 = vmatprep.mubr.msk.f32.mxu1 %vm626_vm0, %v318_v44  ;;  %v383_v31 = vld [vmem:[%s3199_s3 + $0x168] sm:$0xff]  ;;  %v382_v32 = vld [vmem:[%s3199_s3 + $0x160] sm:$0xff]  ;;  %v385_v33 = vld [vmem:[%s3199_s3 + $0x178] sm:$0xff] }
  0x49   : > { %v384_v34 = vld [vmem:[%s3199_s3 + $0x170] sm:$0xff]  ;;  %v1554_v35 = vld [vmem:[#allocation2] sm:$0x1] }
  0x4a   : > { %1943 = vmatmul.mubr.msk.f32.gmra.mrb[12].mxu0 %vm626_vm0, %v303_v45  ;;  %1967 = vmatmul.mubr.msk.f32.gmra.mrb[12].mxu1 %vm626_vm0, %v319_v46  ;;  %v1130_v36 = vld [vmem:[%s3200_s4] sm:$0xff]  ;;  %v2895_v46 = vstv %s1080_s24  ;;  %s2368_s24 = scalar_lea.vmem %s3156_s19, 16 }
  0x4b   : > { %473 = vperm.xlu1 %2352, %v355_v47   ;;  %468 = vperm.xlu0 %2351, %v354_v48   ;;  %p2369_p9 = scmp.ne.s32.totalorder %s3156_s19, %s2368_s24  ;;  %p2376_p0 = scmp.lt.s32.totalorder %s2374_s30, %s2368_s24 }
  0x4c   : > { %1945 = vmatprep.mubr.msk.f32.mxu0 %vm626_vm0, %v304_v49  ;;  %1969 = vmatprep.mubr.msk.f32.mxu1 %vm626_vm0, %v320_v50 }
  0x4d   : > { %p2370_p10 = pnand %p2369_p9, %p2523_p5  ;;  %p2377_p1 = por %p2376_p0, %p2375_p13 }
  0x4e   : > { %1946 = vmatmul.mubr.msk.f32.gmra.mrb[14].mxu0 %vm626_vm0, %v305_v51  ;;  %1970 = vmatmul.mubr.msk.f32.gmra.mrb[14].mxu1 %vm626_vm0, %v321_v52 }
  0x4f   : > { %483 = vperm.xlu1 %2352, %v357_v53   ;;  %478 = vperm.xlu0 %2351, %v356_v54   ;;  %p2371_p12 = pneg %p2370_p10 }
  0x50   : > { %1972 = vmatprep.mubr.msk.f32.mxu1 %vm626_vm0, %v322_v55  ;;  %2028 = vmatprep.mubr.f32.mxu0 %v1130_v36 }
  0x51   : > { %p2378_p2 = pnand %p2377_p1, %p2371_p12 }
  0x52   : > { %1973 = vmatmul.mubr.msk.f32.gmra.mrb[16].mxu1 %vm626_vm0, %v323_v56 }
  0x53   : > { %493 = vperm.xlu1 %2352, %v359_v57   ;;  %488 = vperm.xlu0 %2351, %v358_v58  }
  0x54   : > { %1975 = vmatprep.mubr.msk.f32.mxu1 %vm626_vm0, %v324_v59 }
  0x56   : > { %1976 = vmatmul.mubr.msk.f32.gmra.mrb[18].mxu1 %vm626_vm0, %v325_v60 }
  0x57   : > { %503 = vperm.xlu1 %2352, %v361_v61   ;;  %498 = vperm.xlu0 %2351, %v360_v62  }
  0x58   : > { %1978 = vmatprep.mubr.msk.f32.mxu1 %vm626_vm0, %v326_v63 }
  0x5a   : > { %1979 = vmatmul.mubr.msk.f32.gmra.mrb[20].mxu1 %vm626_vm0, %v327_v0 }
  0x5b   : > { %513 = vperm.xlu1 %2352, %v363_v1   ;;  %508 = vperm.xlu0 %2351, %v362_v2  }
  0x5c   : > { %1981 = vmatprep.mubr.msk.f32.mxu1 %vm626_vm0, %v328_v3 }
  0x5e   : > { %1982 = vmatmul.mubr.msk.f32.gmra.mrb[22].mxu1 %vm626_vm0, %v329_v4 }
  0x5f   : > { %523 = vperm.xlu1 %2352, %v365_v5   ;;  %518 = vperm.xlu0 %2351, %v364_v6  }
  0x60   : > { %1984 = vmatprep.mubr.msk.f32.mxu1 %vm626_vm0, %v330_v7 }
  0x62   : > { %1985 = vmatmul.mubr.msk.f32.gmra.mrb[24].mxu1 %vm626_vm0, %v331_v8 }
  0x63   : > { %533 = vperm.xlu1 %2352, %v367_v9   ;;  %528 = vperm.xlu0 %2351, %v366_v10  }
  0x64   : > { %1987 = vmatprep.mubr.msk.f32.mxu1 %vm626_vm0, %v332_v11 }
  0x66   : > { %1988 = vmatmul.mubr.msk.f32.gmra.mrb[26].mxu1 %vm626_vm0, %v333_v12 }
  0x67   : > { %543 = vperm.xlu1 %2352, %v369_v13   ;;  %538 = vperm.xlu0 %2351, %v368_v14  }
  0x68   : > { %1990 = vmatprep.mubr.msk.f32.mxu1 %vm626_vm0, %v334_v15 }
  0x6a   : > { %1991 = vmatmul.mubr.msk.f32.gmra.mrb[28].mxu1 %vm626_vm0, %v335_v16 }
  0x6b   : > { %553 = vperm.xlu1 %2352, %v371_v17   ;;  %548 = vperm.xlu0 %2351, %v370_v18  }
  0x6c   : > { %1993 = vmatprep.mubr.msk.f32.mxu1 %vm626_vm0, %v336_v19 }
  0x6e   : > { %1994 = vmatmul.mubr.msk.f32.gmra.mrb[30].mxu1 %vm626_vm0, %v337_v20 }
  0x6f   : > { %563 = vperm.xlu1 %2352, %v373_v21   ;;  %558 = vperm.xlu0 %2351, %v372_v22  }
  0x73   : > { %573 = vperm.xlu1 %2352, %v375_v23   ;;  %568 = vperm.xlu0 %2351, %v374_v24  }
  0x77   : > { %583 = vperm.xlu1 %2352, %v377_v25   ;;  %578 = vperm.xlu0 %2351, %v376_v26  }
  0x7b   : > { %593 = vperm.xlu1 %2352, %v379_v27   ;;  %588 = vperm.xlu0 %2351, %v378_v28  }
  0x7f   : > { %603 = vperm.xlu1 %2352, %v381_v29   ;;  %598 = vperm.xlu0 %2351, %v380_v30  }
  0x83   : > { %613 = vperm.xlu1 %2352, %v383_v31   ;;  %608 = vperm.xlu0 %2351, %v382_v32  }
  0x87   : > { %623 = vperm.xlu1 %2352, %v385_v33   ;;  %618 = vperm.xlu0 %2351, %v384_v34  }
  0x8b   : > { %1557 = vperm.xlu0 %2351, %v1554_v35  }
  0xaa   : > { %v399_v37 = vpop.permute.xlu1 %398  ;;  %v389_v38 = vpop.permute.xlu0 %388 }
  0xae   : > { %v404_v39 = vpop.permute.xlu1 %403  ;;  %v394_v40 = vpop.permute.xlu0 %393 }
  0xb2   : > { %v414_v41 = vpop.permute.xlu1 %413  ;;  %v409_v42 = vpop.permute.xlu0 %408 }
  0xb6   : > { %v424_v43 = vpop.permute.xlu1 %423  ;;  %v419_v44 = vpop.permute.xlu0 %418 }
  0xba   : > { %v434_v51 = vpop.permute.xlu1 %433  ;;  %v429_v56 = vpop.permute.xlu0 %428 }
  0xbe   : > { %v444_v11 = vpop.permute.xlu1 %443  ;;  %v439_v12 = vpop.permute.xlu0 %438 }
  0xc2   : > { %v454_v35 = vpop.permute.xlu1 %453  ;;  %v449_v36 = vpop.permute.xlu0 %448 }
 0x105   : > { %v1926_v45 = vpop.f32.mrb[0].mxu0  ;;  %v2897_v47 = vpop.f32.mrb[0].mxu1 }
 0x106   : > { %v847_v48 = vadd.f32 %v1926_v45, %v394_v40  ;;  %v841_v49 = vpop.f32.mrb[1].mxu0  ;;  %v2899_v50 = vpop.f32.mrb[1].mxu1 }
 0x107   : > { %v842_v53 = vadd.f32 %v841_v49, %v389_v38 }
 0x108   : > { %vm1082_vm2 = vcmp.ge.f32.partialorder %v847_v48, 0.0  ;;  %v1099_v52 = vmul.f32 %v2895_v46, %v847_v48 }
 0x109   : > { %v1929_v54 = vpop.f32.mrb[2].mxu0  ;;  %v2902_v55 = vpop.f32.mrb[2].mxu1  ;;  %vm1081_vm3 = vcmp.ge.f32.partialorder %v842_v53, 0.0  ;;  %v1098_v57 = vmul.f32 %v2895_v46, %v842_v53 }
 0x10a   : > { %v857_v58 = vadd.f32 %v1929_v54, %v404_v39  ;;  %v851_v59 = vpop.f32.mrb[3].mxu0  ;;  %v2905_v61 = vpop.f32.mrb[3].mxu1  ;;  %v1115_v62 = vsel %vm1082_vm2, %v847_v48, %v1099_v52 }
 0x10b   : > { %v852_v60 = vadd.f32 %v851_v59, %v399_v37  ;;  %v1114_v0 = vsel %vm1081_vm3, %v842_v53, %v1098_v57 }
 0x10c   : > { %vm1084_vm4 = vcmp.ge.f32.partialorder %v857_v58, 0.0  ;;  %v1101_v63 = vmul.f32 %v2895_v46, %v857_v58  ;;  %v2143_v4 = vpack.c.bf16 %v1115_v62, %v1114_v0  ;;  %v464_v0 = vpop.permute.xlu1 %463 }
 0x10d   : > { %vm1083_vm5 = vcmp.ge.f32.partialorder %v852_v60, 0.0  ;;  %v1100_v1 = vmul.f32 %v2895_v46, %v852_v60  ;;  %v1932_v2 = vpop.f32.mrb[4].mxu0  ;;  %v2909_v3 = vpop.f32.mrb[4].mxu1 }
 0x10e   : > { %v867_v5 = vadd.f32 %v1932_v2, %v414_v41  ;;  %v861_v6 = vpop.f32.mrb[5].mxu0  ;;  %v2911_v7 = vpop.f32.mrb[5].mxu1  ;;  %v1117_v8 = vsel %vm1084_vm4, %v857_v58, %v1101_v63  ;;  %2144 = vmatprep.subr.bf16.mxu0 %v2143_v4 }
 0x10f   : > { %v862_v9 = vadd.f32 %v861_v6, %v409_v42  ;;  %v1116_v10 = vsel %vm1083_vm5, %v852_v60, %v1100_v1  ;;  %2146 = vmatpush3.bf16.msra.mxu0 %v2143_v4  ;;  %v459_v1 = vpop.permute.xlu0 %458 }
 0x110   : > { %vm1086_vm6 = vcmp.ge.f32.partialorder %v867_v5, 0.0  ;;  %v1103_v13 = vmul.f32 %v2895_v46, %v867_v5  ;;  %v2147_v14 = vpack.c.bf16 %v1117_v8, %v1116_v10 }
 0x111   : > { %vm1085_vm7 = vcmp.ge.f32.partialorder %v862_v9, 0.0  ;;  %v1102_v15 = vmul.f32 %v2895_v46, %v862_v9  ;;  %v1935_v16 = vpop.f32.mrb[6].mxu0  ;;  %v2915_v17 = vpop.f32.mrb[6].mxu1 }
 0x112   : > { %v877_v18 = vadd.f32 %v1935_v16, %v424_v43  ;;  %v871_v19 = vpop.f32.mrb[7].mxu0  ;;  %v2917_v20 = vpop.f32.mrb[7].mxu1  ;;  %2148 = vmatprep.subr.bf16.mxu0 %v2147_v14  ;;  %v1119_v21 = vsel %vm1086_vm6, %v867_v5, %v1103_v13 }
 0x113   : > { %v872_v22 = vadd.f32 %v871_v19, %v419_v44  ;;  %v1118_v23 = vsel %vm1085_vm7, %v862_v9, %v1102_v15  ;;  %2150 = vmatpush3.bf16.msra.mxu0 %v2147_v14 }
 0x114   : > { %vm1088_vm8 = vcmp.ge.f32.partialorder %v877_v18, 0.0  ;;  %v1105_v24 = vmul.f32 %v2895_v46, %v877_v18  ;;  %v2151_v25 = vpack.c.bf16 %v1119_v21, %v1118_v23 }
 0x115   : > { %vm1087_vm9 = vcmp.ge.f32.partialorder %v872_v22, 0.0  ;;  %v1104_v26 = vmul.f32 %v2895_v46, %v872_v22  ;;  %v1938_v27 = vpop.f32.mrb[8].mxu0  ;;  %v2921_v28 = vpop.f32.mrb[8].mxu1 }
 0x116   : > { %v887_v29 = vadd.f32 %v1938_v27, %v434_v51  ;;  %v881_v30 = vpop.f32.mrb[9].mxu0  ;;  %v2923_v31 = vpop.f32.mrb[9].mxu1  ;;  %2152 = vmatprep.subr.bf16.mxu0 %v2151_v25  ;;  %v1121_v32 = vsel %vm1088_vm8, %v877_v18, %v1105_v24  ;;  %v1131_v27 = vld [vmem:[%s3200_s4 + $0x8] sm:$0xff] }
 0x117   : > { %v882_v33 = vadd.f32 %v881_v30, %v429_v56  ;;  %v1120_v34 = vsel %vm1087_vm9, %v872_v22, %v1104_v26  ;;  %2154 = vmatpush3.bf16.msra.mxu0 %v2151_v25 }
 0x118   : > { %vm1090_vm10 = vcmp.ge.f32.partialorder %v887_v29, 0.0  ;;  %v1107_v37 = vmul.f32 %v2895_v46, %v887_v29  ;;  %v2155_v38 = vpack.c.bf16 %v1121_v32, %v1120_v34  ;;  %v1133_v32 = vld [vmem:[%s3200_s4 + $0x18] sm:$0xff]  ;;  %v1134_v34 = vld [vmem:[%s3200_s4 + $0x20] sm:$0xff] }
 0x119   : > { %vm1089_vm11 = vcmp.ge.f32.partialorder %v882_v33, 0.0  ;;  %v1106_v39 = vmul.f32 %v2895_v46, %v882_v33  ;;  %v1941_v40 = vpop.f32.mrb[10].mxu0  ;;  %v2927_v41 = vpop.f32.mrb[10].mxu1 }
 0x11a   : > { %v897_v42 = vadd.f32 %v1941_v40, %v444_v11  ;;  %v891_v43 = vpop.f32.mrb[11].mxu0  ;;  %v2929_v44 = vpop.f32.mrb[11].mxu1  ;;  %2156 = vmatprep.subr.bf16.mxu0 %v2155_v38  ;;  %v1123_v45 = vsel %vm1090_vm10, %v887_v29, %v1107_v37  ;;  %v1132_v29 = vld [vmem:[%s3200_s4 + $0x10] sm:$0xff]  ;;  %v1137_v40 = vld [vmem:[%s3200_s4 + $0x38] sm:$0xff] }
 0x11b   : > { %v892_v48 = vadd.f32 %v891_v43, %v439_v12  ;;  %v1122_v49 = vsel %vm1089_vm11, %v882_v33, %v1106_v39  ;;  %2158 = vmatpush3.bf16.msra.mxu0 %v2155_v38  ;;  %v1136_v38 = vld [vmem:[%s3200_s4 + $0x30] sm:$0xff]  ;;  %v1138_v43 = vld [vmem:[%s3200_s4 + $0x40] sm:$0xff] }
 0x11c   : > { %vm1092_vm12 = vcmp.ge.f32.partialorder %v897_v42, 0.0  ;;  %v1109_v51 = vmul.f32 %v2895_v46, %v897_v42  ;;  %v2159_v52 = vpack.c.bf16 %v1123_v45, %v1122_v49 }
 0x11d   : > { %vm1091_vm13 = vcmp.ge.f32.partialorder %v892_v48, 0.0  ;;  %v1108_v53 = vmul.f32 %v2895_v46, %v892_v48  ;;  %v1944_v54 = vpop.f32.mrb[12].mxu0  ;;  %v2933_v56 = vpop.f32.mrb[12].mxu1 }
 0x11e   : > { %v907_v57 = vadd.f32 %v1944_v54, %v454_v35  ;;  %v901_v58 = vpop.f32.mrb[13].mxu0  ;;  %v2935_v59 = vpop.f32.mrb[13].mxu1  ;;  %2160 = vmatprep.subr.bf16.mxu0 %v2159_v52  ;;  %v1125_v60 = vsel %vm1092_vm12, %v897_v42, %v1109_v51  ;;  %v1140_v51 = vld [vmem:[%s3200_s4 + $0x50] sm:$0xff] }
 0x11f   : > { %v902_v62 = vadd.f32 %v901_v58, %v449_v36  ;;  %v1124_v63 = vsel %vm1091_vm13, %v892_v48, %v1108_v53  ;;  %2162 = vmatpush3.bf16.msra.mxu0 %v2159_v52  ;;  %v1135_v36 = vld [vmem:[%s3200_s4 + $0x28] sm:$0xff]  ;;  %v1141_v53 = vld [vmem:[%s3200_s4 + $0x58] sm:$0xff] }
 0x120   : > { %vm1094_vm14 = vcmp.ge.f32.partialorder %v907_v57, 0.0  ;;  %v1111_v2 = vmul.f32 %v2895_v46, %v907_v57  ;;  %v2163_v4 = vpack.c.bf16 %v1125_v60, %v1124_v63  ;;  %v1139_v48 = vld [vmem:[%s3200_s4 + $0x48] sm:$0xff]  ;;  %v1145_v63 = vld [vmem:[%s3200_s4 + $0x78] sm:$0xff] }
 0x121   : > { %vm1093_vm15 = vcmp.ge.f32.partialorder %v902_v62, 0.0  ;;  %v1110_v5 = vmul.f32 %v2895_v46, %v902_v62  ;;  %v1947_v6 = vpop.f32.mrb[14].mxu0  ;;  %v2939_v8 = vpop.f32.mrb[14].mxu1  ;;  %v1143_v60 = vld [vmem:[%s3200_s4 + $0x68] sm:$0xff] }
 0x122   : > { %v917_v9 = vadd.f32 %v1947_v6, %v464_v0  ;;  %v911_v10 = vpop.f32.mrb[15].mxu0  ;;  %v2941_v11 = vpop.f32.mrb[15].mxu1  ;;  %2164 = vmatprep.subr.bf16.mxu0 %v2163_v4  ;;  %v1127_v12 = vsel %vm1094_vm14, %v907_v57, %v1111_v2  ;;  %v1142_v57 = vld [vmem:[%s3200_s4 + $0x60] sm:$0xff] }
 0x123   : > { %v912_v13 = vadd.f32 %v911_v10, %v459_v1  ;;  %v1126_v14 = vsel %vm1093_vm15, %v902_v62, %v1110_v5  ;;  %2166 = vmatpush3.bf16.msra.mxu0 %v2163_v4  ;;  %v1144_v62 = vld [vmem:[%s3200_s4 + $0x70] sm:$0xff]  ;;  %v1772_v0 = vld [vmem:[%s3200_s4 + $0x80] sm:$0xff]  ;;  %v474_v1 = vpop.permute.xlu1 %473  ;;  %v469_v2 = vpop.permute.xlu0 %468 }
 0x124   : > { %vm1096_vm0 = vcmp.ge.f32.partialorder %v917_v9, 0.0  ;;  %v1113_v15 = vmul.f32 %v2895_v46, %v917_v9  ;;  %v2167_v16 = vpack.c.bf16 %v1127_v12, %v1126_v14  ;;  %v927_v10 = vadd.f32 %v2897_v47, %v474_v1 }
 0x125   : > { %vm1095_vm1 = vcmp.ge.f32.partialorder %v912_v13, 0.0  ;;  %v1112_v18 = vmul.f32 %v2895_v46, %v912_v13  ;;  %v2945_v19 = vpop.f32.mrb[16].mxu1  ;;  %v922_v12 = vadd.f32 %v2899_v50, %v469_v2  ;;  %v3027_v14 = vstv %s1771_s9 }
 0x126   : > { %v2947_v21 = vpop.f32.mrb[17].mxu1  ;;  %2168 = vmatprep.subr.bf16.mxu0 %v2167_v16  ;;  %v1129_v22 = vsel %vm1096_vm0, %v917_v9, %v1113_v15 }
 0x127   : > { %v1128_v23 = vsel %vm1095_vm1, %v912_v13, %v1112_v18  ;;  %2170 = vmatpush3.bf16.msra.mxu0 %v2167_v16  ;;  %v484_v4 = vpop.permute.xlu1 %483  ;;  %v479_v5 = vpop.permute.xlu0 %478 }
 0x128   : > { %v2171_v24 = vpack.c.bf16 %v1129_v22, %v1128_v23 }
 0x129   : > { %v2949_v25 = vpop.f32.mrb[18].mxu1 }
 0x12a   : > { %v2951_v26 = vpop.f32.mrb[19].mxu1  ;;  %2172 = vmatprep.subr.bf16.mxu0 %v2171_v24 }
 0x12b   : > { %2174 = vmatpush3.bf16.msra.mxu0 %v2171_v24  ;;  %v494_v6 = vpop.permute.xlu1 %493  ;;  %v489_v9 = vpop.permute.xlu0 %488  ;;  %v937_v24 = vadd.f32 %v2902_v55, %v484_v4 }
 0x12d   : > { %v2956_v46 = vpop.f32.mrb[20].mxu1 }
 0x12e   : > { %v2961_v30 = vpop.f32.mrb[21].mxu1  ;;  %2029 = vmatmul.mubr.f32.vlgmr.msra.gmra.mrb[16].mxu0 %v1131_v27 }
 0x12f   : > { %2031 = vmatprep.mubr.f32.mxu0 %v1132_v29  ;;  %v504_v18 = vpop.permute.xlu1 %503  ;;  %v499_v23 = vpop.permute.xlu0 %498  ;;  %v932_v29 = vadd.f32 %v2905_v61, %v479_v5 }
 0x131   : > { %v2966_v33 = vpop.f32.mrb[22].mxu1 }
 0x132   : > { %v2971_v35 = vpop.f32.mrb[23].mxu1  ;;  %2032 = vmatmul.mubr.f32.gmra.mrb[18].mxu0 %v1133_v32 }
 0x133   : > { %2034 = vmatprep.mubr.f32.mxu0 %v1134_v34 }
 0x135   : > { %v2976_v37 = vpop.f32.mrb[24].mxu1 }
 0x136   : > { %v2981_v39 = vpop.f32.mrb[25].mxu1  ;;  %2035 = vmatmul.mubr.f32.gmra.mrb[20].mxu0 %v1135_v36 }
 0x137   : > { %2037 = vmatprep.mubr.f32.mxu0 %v1136_v38 }
 0x139   : > { %v2986_v42 = vpop.f32.mrb[26].mxu1 }
 0x13a   : > { %v2991_v45 = vpop.f32.mrb[27].mxu1  ;;  %2038 = vmatmul.mubr.f32.gmra.mrb[22].mxu0 %v1137_v40 }
 0x13b   : > { %2040 = vmatprep.mubr.f32.mxu0 %v1138_v43  ;;  %v947_v43 = vadd.f32 %v2909_v3, %v494_v6  ;;  %v957_v3 = vadd.f32 %v2915_v17, %v504_v18 }
 0x13d   : > { %v2996_v49 = vpop.f32.mrb[28].mxu1 }
 0x13e   : > { %v3001_v52 = vpop.f32.mrb[29].mxu1  ;;  %2041 = vmatmul.mubr.f32.gmra.mrb[24].mxu0 %v1139_v48 }
 0x13f   : > { %2043 = vmatprep.mubr.f32.mxu0 %v1140_v51  ;;  %v514_v51 = vpop.permute.xlu1 %513 }
 0x140   : > { %v967_v17 = vadd.f32 %v2921_v28, %v514_v51 }
 0x141   : > { %v3006_v54 = vpop.f32.mrb[30].mxu1 }
 0x142   : > { %v3011_v58 = vpop.f32.mrb[31].mxu1  ;;  %2044 = vmatmul.mubr.f32.gmra.mrb[26].mxu0 %v1141_v53  ;;  %v942_v53 = vadd.f32 %v2911_v7, %v489_v9  ;;  %v952_v7 = vadd.f32 %v2917_v20, %v499_v23 }
 0x143   : > { %2046 = vmatprep.mubr.f32.mxu0 %v1142_v57 }
 0x146   : > { %2047 = vmatmul.mubr.f32.gmra.mrb[28].mxu0 %v1143_v60  ;;  %v509_v60 = vpop.permute.xlu0 %508 }
 0x147   : > { %2049 = vmatprep.mubr.f32.mxu0 %v1144_v62  ;;  %v962_v20 = vadd.f32 %v2923_v31, %v509_v60 }
 0x14a   : > { %2050 = vmatmul.mubr.f32.gmra.mrb[30].mxu0 %v1145_v63 }
 0x14b   : > { %2084 = vmatprep.mubr.f32.mxu0 %v1772_v0 }
 0x201   : > { %v2030_v13 = vpop.f32.mrb[16].mxu0 }
 0x202   : > { %v1218_v15 = vadd.f32 %v2030_v13, %v927_v10  ;;  %v1212_v16 = vpop.f32.mrb[17].mxu0 }
 0x203   : > { %v1213_v22 = vadd.f32 %v1212_v16, %v922_v12 }
 0x204   : > { %vm1293_vm2 = vcmp.ge.f32.partialorder %v1218_v15, 0.0  ;;  %v1310_v27 = vmul.f32 %v3027_v14, %v1218_v15 }
 0x205   : > { %vm1292_vm3 = vcmp.ge.f32.partialorder %v1213_v22, 0.0  ;;  %v1309_v47 = vmul.f32 %v3027_v14, %v1213_v22  ;;  %v2033_v32 = vpop.f32.mrb[18].mxu0 }
 0x206   : > { %v1228_v50 = vadd.f32 %v2033_v32, %v937_v24  ;;  %v1222_v34 = vpop.f32.mrb[19].mxu0  ;;  %v1326_v36 = vsel %vm1293_vm2, %v1218_v15, %v1310_v27  ;;  %v524_v15 = vpop.permute.xlu1 %523  ;;  %vm2439_vm2 = vmmov 0  }
 0x207   : > { %v1223_v38 = vadd.f32 %v1222_v34, %v932_v29  ;;  %v1325_v40 = vsel %vm1292_vm3, %v1213_v22, %v1309_v47  ;;  %v519_v24 = vpop.permute.xlu0 %518 }
 0x208   : > { %vm1295_vm4 = vcmp.ge.f32.partialorder %v1228_v50, 0.0  ;;  %v1312_v48 = vmul.f32 %v3027_v14, %v1228_v50  ;;  %v2175_v55 = vpack.c.bf16 %v1326_v36, %v1325_v40  ;;  %v972_v31 = vadd.f32 %v2929_v44, %v519_v24 }
 0x209   : > { %vm1294_vm5 = vcmp.ge.f32.partialorder %v1223_v38, 0.0  ;;  %v1311_v61 = vmul.f32 %v3027_v14, %v1223_v38  ;;  %v2036_v57 = vpop.f32.mrb[20].mxu0 }
 0x20a   : > { %v1238_v62 = vadd.f32 %v2036_v57, %v947_v43  ;;  %v1232_v63 = vpop.f32.mrb[21].mxu0  ;;  %2176 = vmatprep.subr.bf16.mxu0 %v2175_v55  ;;  %v1328_v0 = vsel %vm1295_vm4, %v1228_v50, %v1312_v48  ;;  %v534_v43 = vpop.permute.xlu1 %533 }
 0x20b   : > { %v1233_v1 = vadd.f32 %v1232_v63, %v942_v53  ;;  %2178 = vmatpush3.bf16.msra.mxu0 %v2175_v55  ;;  %v1327_v2 = vsel %vm1294_vm5, %v1223_v38, %v1311_v61  ;;  %v977_v38 = vadd.f32 %v2927_v41, %v524_v15  ;;  %v529_v51 = vpop.permute.xlu0 %528  ;;  %v987_v41 = vadd.f32 %v2933_v56, %v534_v43  ;;  %v1781_v43 = vld [vmem:[%s3200_s4 + $0xc8] sm:$0xff] }
 0x20c   : > { %vm1297_vm6 = vcmp.ge.f32.partialorder %v1238_v62, 0.0  ;;  %v1314_v4 = vmul.f32 %v3027_v14, %v1238_v62  ;;  %v2179_v5 = vpack.c.bf16 %v1328_v0, %v1327_v2  ;;  %v982_v44 = vadd.f32 %v2935_v59, %v529_v51  ;;  %v1785_v51 = vld [vmem:[%s3200_s4 + $0xe8] sm:$0xff] }
 0x20d   : > { %vm1296_vm7 = vcmp.ge.f32.partialorder %v1233_v1, 0.0  ;;  %v1313_v6 = vmul.f32 %v3027_v14, %v1233_v1  ;;  %v2039_v9 = vpop.f32.mrb[22].mxu0 }
 0x20e   : > { %v1248_v10 = vadd.f32 %v2039_v9, %v957_v3  ;;  %v1242_v12 = vpop.f32.mrb[23].mxu0  ;;  %2180 = vmatprep.subr.bf16.mxu0 %v2179_v5  ;;  %v1330_v13 = vsel %vm1297_vm6, %v1238_v62, %v1314_v4 }
 0x20f   : > { %v1243_v16 = vadd.f32 %v1242_v12, %v952_v7  ;;  %2182 = vmatpush3.bf16.msra.mxu0 %v2179_v5  ;;  %v1329_v22 = vsel %vm1296_vm7, %v1233_v1, %v1313_v6  ;;  %v544_v7 = vpop.permute.xlu1 %543 }
 0x210   : > { %vm1299_vm8 = vcmp.ge.f32.partialorder %v1248_v10, 0.0  ;;  %v1316_v18 = vmul.f32 %v3027_v14, %v1248_v10  ;;  %v2183_v27 = vpack.c.bf16 %v1330_v13, %v1329_v22  ;;  %v997_v56 = vadd.f32 %v2939_v8, %v544_v7 }
 0x211   : > { %vm1298_vm9 = vcmp.ge.f32.partialorder %v1243_v16, 0.0  ;;  %v1315_v23 = vmul.f32 %v3027_v14, %v1243_v16  ;;  %v2042_v29 = vpop.f32.mrb[24].mxu0 }
 0x212   : > { %v1258_v47 = vadd.f32 %v2042_v29, %v967_v17  ;;  %v1252_v32 = vpop.f32.mrb[25].mxu0  ;;  %2184 = vmatprep.subr.bf16.mxu0 %v2183_v27  ;;  %v1332_v50 = vsel %vm1299_vm8, %v1248_v10, %v1316_v18  ;;  %v539_v10 = vpop.permute.xlu0 %538 }
 0x213   : > { %v1253_v34 = vadd.f32 %v1252_v32, %v962_v20  ;;  %2186 = vmatpush3.bf16.msra.mxu0 %v2183_v27  ;;  %v1331_v36 = vsel %vm1298_vm9, %v1243_v16, %v1315_v23  ;;  %v992_v59 = vadd.f32 %v2941_v11, %v539_v10  ;;  %v1773_v32 = vld [vmem:[%s3200_s4 + $0x88] sm:$0xff] }
 0x214   : > { %vm1301_vm10 = vcmp.ge.f32.partialorder %v1258_v47, 0.0  ;;  %v1318_v28 = vmul.f32 %v3027_v14, %v1258_v47  ;;  %v2187_v40 = vpack.c.bf16 %v1332_v50, %v1331_v36  ;;  %v1774_v50 = vld [vmem:[%s3200_s4 + $0x90] sm:$0xff]  ;;  %v1777_v36 = vld [vmem:[%s3200_s4 + $0xa8] sm:$0xff] }
 0x215   : > { %vm1300_vm11 = vcmp.ge.f32.partialorder %v1253_v34, 0.0  ;;  %v1317_v48 = vmul.f32 %v3027_v14, %v1253_v34  ;;  %v2045_v55 = vpop.f32.mrb[26].mxu0 }
 0x216   : > { %v1268_v53 = vadd.f32 %v2045_v55, %v977_v38  ;;  %v1262_v61 = vpop.f32.mrb[27].mxu0  ;;  %2188 = vmatprep.subr.bf16.mxu0 %v2187_v40  ;;  %v1334_v57 = vsel %vm1301_vm10, %v1258_v47, %v1318_v28  ;;  %v1778_v38 = vld [vmem:[%s3200_s4 + $0xb0] sm:$0xff]  ;;  %v1779_v28 = vld [vmem:[%s3200_s4 + $0xb8] sm:$0xff]  ;;  %v1784_v55 = vld [vmem:[%s3200_s4 + $0xe0] sm:$0xff] }
 0x217   : > { %v1263_v60 = vadd.f32 %v1262_v61, %v972_v31  ;;  %2190 = vmatpush3.bf16.msra.mxu0 %v2187_v40  ;;  %v1333_v62 = vsel %vm1300_vm11, %v1253_v34, %v1317_v48  ;;  %v1776_v34 = vld [vmem:[%s3200_s4 + $0xa0] sm:$0xff]  ;;  %v1782_v31 = vld [vmem:[%s3200_s4 + $0xd0] sm:$0xff]  ;;  %v1783_v48 = vld [vmem:[%s3200_s4 + $0xd8] sm:$0xff] }
 0x218   : > { %vm1303_vm12 = vcmp.ge.f32.partialorder %v1268_v53, 0.0  ;;  %v1320_v63 = vmul.f32 %v3027_v14, %v1268_v53  ;;  %v2191_v0 = vpack.c.bf16 %v1334_v57, %v1333_v62  ;;  %v1780_v40 = vld [vmem:[%s3200_s4 + $0xc0] sm:$0xff]  ;;  %v1787_v61 = vld [vmem:[%s3200_s4 + $0xf8] sm:$0xff]  ;;  %v2438_v57 = vmov 0.0|0.0   ;;  %v554_v62 = vpop.permute.xlu1 %553 }
 0x219   : > { %vm1302_vm13 = vcmp.ge.f32.partialorder %v1263_v60, 0.0  ;;  %v1319_v1 = vmul.f32 %v3027_v14, %v1263_v60  ;;  %v2048_v2 = vpop.f32.mrb[28].mxu0  ;;  %2207 = vmatprep.subr.bf16.mxu1 %v2438_v57 }
 0x21a   : > { %v1278_v3 = vadd.f32 %v2048_v2, %v987_v41  ;;  %v1272_v4 = vpop.f32.mrb[29].mxu0  ;;  %2192 = vmatprep.subr.bf16.mxu0 %v2191_v0  ;;  %v1336_v5 = vsel %vm1303_vm12, %v1268_v53, %v1320_v63  ;;  %v1786_v53 = vld [vmem:[%s3200_s4 + $0xf0] sm:$0xff]  ;;  %v549_v41 = vpop.permute.xlu0 %548  ;;  %v1007_v2 = vadd.f32 %v2945_v19, %v554_v62 }
 0x21b   : > { %v1273_v6 = vadd.f32 %v1272_v4, %v982_v44  ;;  %2194 = vmatpush3.bf16.msra.mxu0 %v2191_v0  ;;  %v1335_v9 = vsel %vm1302_vm13, %v1263_v60, %v1319_v1  ;;  %v2440_v60 = vmov 0.0  }
 0x21c   : > { %vm1305_vm14 = vcmp.ge.f32.partialorder %v1278_v3, 0.0  ;;  %v1322_v12 = vmul.f32 %v3027_v14, %v1278_v3  ;;  %v2195_v13 = vpack.c.bf16 %v1336_v5, %v1335_v9  ;;  %2140 = vmatprep.mubr.msk.f32.mxu1 %vm2439_vm2, %v2440_v60  ;;  %v564_v63 = vpop.permute.xlu1 %563  ;;  %v3107_v5 = vstv %s1788_s10 }
 0x21d   : > { %vm1304_vm15 = vcmp.ge.f32.partialorder %v1273_v6, 0.0  ;;  %v1321_v15 = vmul.f32 %v3027_v14, %v1273_v6  ;;  %v2051_v16 = vpop.f32.mrb[30].mxu0 }
 0x21e   : > { %v1288_v22 = vadd.f32 %v2051_v16, %v997_v56  ;;  %v1282_v24 = vpop.f32.mrb[31].mxu0  ;;  %2196 = vmatprep.subr.bf16.mxu0 %v2195_v13  ;;  %v1338_v17 = vsel %vm1305_vm14, %v1278_v3, %v1322_v12  ;;  %v559_v0 = vpop.permute.xlu0 %558  ;;  %v1002_v3 = vadd.f32 %v2947_v21, %v549_v41  ;;  %v1017_v12 = vadd.f32 %v2949_v25, %v564_v63 }
 0x21f   : > { %v1283_v18 = vadd.f32 %v1282_v24, %v992_v59  ;;  %2198 = vmatpush3.bf16.msra.mxu0 %v2195_v13  ;;  %v1337_v27 = vsel %vm1304_vm15, %v1273_v6, %v1321_v15  ;;  %v1012_v59 = vadd.f32 %v2951_v26, %v559_v0 }
 0x220   : > { %vm1307_vm0 = vcmp.ge.f32.partialorder %v1288_v22, 0.0  ;;  %v1324_v8 = vmul.f32 %v3027_v14, %v1288_v22  ;;  %v2199_v20 = vpack.c.bf16 %v1338_v17, %v1337_v27  ;;  %v574_v44 = vpop.permute.xlu1 %573 }
 0x221   : > { %vm1306_vm1 = vcmp.ge.f32.partialorder %v1283_v18, 0.0  ;;  %v1323_v23 = vmul.f32 %v3027_v14, %v1283_v18  ;;  %v1775_v14 = vld [vmem:[%s3200_s4 + $0x98] sm:$0xff] }
 0x222   : > { %2200 = vmatprep.subr.bf16.mxu0 %v2199_v20  ;;  %v1340_v11 = vsel %vm1307_vm0, %v1288_v22, %v1324_v8  ;;  %v569_v1 = vpop.permute.xlu0 %568 }
 0x223   : > { %2202 = vmatpush3.bf16.msra.mxu0 %v2199_v20  ;;  %v1339_v29 = vsel %vm1306_vm1, %v1283_v18, %v1323_v23  ;;  %v1027_v18 = vadd.f32 %v2956_v46, %v574_v44  ;;  %v1022_v20 = vadd.f32 %v2961_v30, %v569_v1 }
 0x224   : > { %v2203_v47 = vpack.c.bf16 %v1340_v11, %v1339_v29  ;;  %v584_v9 = vpop.permute.xlu1 %583 }
 0x225   : > { %v1037_v46 = vadd.f32 %v2966_v33, %v584_v9 }
 0x226   : > { %2204 = vmatprep.subr.bf16.mxu0 %v2203_v47  ;;  %v579_v56 = vpop.permute.xlu0 %578 }
 0x227   : > { %2206 = vmatpush3.bf16.msra.mxu0 %v2203_v47  ;;  %v1032_v30 = vadd.f32 %v2971_v35, %v579_v56 }
 0x228   : > { %v594_v8 = vpop.permute.xlu1 %593 }
 0x22a   : > { %2085 = vmatmul.mubr.f32.vlgmr.msra.gmra.mrb[32].mxu0 %v1773_v32  ;;  %v589_v11 = vpop.permute.xlu0 %588 }
 0x22b   : > { %2087 = vmatprep.mubr.f32.mxu0 %v1774_v50  ;;  %v1042_v60 = vadd.f32 %v2981_v39, %v589_v11 }
 0x22e   : > { %2088 = vmatmul.mubr.f32.gmra.mrb[34].mxu0 %v1775_v14  ;;  %v599_v33 = vpop.permute.xlu0 %598 }
 0x22f   : > { %2090 = vmatprep.mubr.f32.mxu0 %v1776_v34  ;;  %v1052_v39 = vadd.f32 %v2991_v45, %v599_v33 }
 0x232   : > { %2091 = vmatmul.mubr.f32.gmra.mrb[36].mxu0 %v1777_v36 }
 0x233   : > { %2093 = vmatprep.mubr.f32.mxu0 %v1778_v38 }
 0x236   : > { %2094 = vmatmul.mubr.f32.gmra.mrb[38].mxu0 %v1779_v28 }
 0x237   : > { %2096 = vmatprep.mubr.f32.mxu0 %v1780_v40 }
 0x23a   : > { %2097 = vmatmul.mubr.f32.gmra.mrb[40].mxu0 %v1781_v43 }
 0x23b   : > { %2099 = vmatprep.mubr.f32.mxu0 %v1782_v31 }
 0x23e   : > { %2100 = vmatmul.mubr.f32.gmra.mrb[42].mxu0 %v1783_v48  ;;  %v604_v48 = vpop.permute.xlu1 %603 }
 0x23f   : > { %2102 = vmatprep.mubr.f32.mxu0 %v1784_v55 }
 0x242   : > { %2103 = vmatmul.mubr.f32.gmra.mrb[44].mxu0 %v1785_v51 }
 0x243   : > { %2105 = vmatprep.mubr.f32.mxu0 %v1786_v53  ;;  %v1047_v53 = vadd.f32 %v2976_v37, %v594_v8  ;;  %v1057_v37 = vadd.f32 %v2986_v42, %v604_v48 }
 0x246   : > { %2106 = vmatmul.mubr.f32.gmra.mrb[46].mxu0 %v1787_v61 }
 0x2fd   : > { %v2086_v4 = vpop.f32.mrb[32].mxu0 }
 0x2fe   : > { %v1430_v7 = vadd.f32 %v2086_v4, %v1007_v2  ;;  %v1424_v6 = vpop.f32.mrb[33].mxu0 }
 0x2ff   : > { %v1425_v10 = vadd.f32 %v1424_v6, %v1002_v3 }
 0x300   : > { %vm1505_vm3 = vcmp.ge.f32.partialorder %v1430_v7, 0.0  ;;  %v1522_v13 = vmul.f32 %v3107_v5, %v1430_v7 }
 0x301   : > { %vm1504_vm4 = vcmp.ge.f32.partialorder %v1425_v10, 0.0  ;;  %v1521_v19 = vmul.f32 %v3107_v5, %v1425_v10  ;;  %v2089_v15 = vpop.f32.mrb[34].mxu0 }
 0x302   : > { %v1538_v21 = vsel %vm1505_vm3, %v1430_v7, %v1522_v13  ;;  %v1440_v16 = vadd.f32 %v2089_v15, %v1017_v12  ;;  %v1434_v22 = vpop.f32.mrb[35].mxu0  ;;  %v614_v7 = vpop.permute.xlu1 %613 }
 0x303   : > { %v1537_v24 = vsel %vm1504_vm4, %v1425_v10, %v1521_v19  ;;  %v1435_v17 = vadd.f32 %v1434_v22, %v1012_v59  ;;  %v609_v10 = vpop.permute.xlu0 %608  ;;  %v1067_v42 = vadd.f32 %v2996_v49, %v614_v7 }
 0x304   : > { %v2208_v27 = vpack.c.bf16 %v1538_v21, %v1537_v24  ;;  %vm1507_vm5 = vcmp.ge.f32.partialorder %v1440_v16, 0.0  ;;  %v1524_v25 = vmul.f32 %v3107_v5, %v1440_v16  ;;  %v1062_v45 = vadd.f32 %v3001_v52, %v609_v10 }
 0x305   : > { %vm1506_vm6 = vcmp.ge.f32.partialorder %v1435_v17, 0.0  ;;  %v1523_v26 = vmul.f32 %v3107_v5, %v1435_v17  ;;  %v2092_v23 = vpop.f32.mrb[36].mxu0 }
 0x306   : > { %v1540_v29 = vsel %vm1507_vm5, %v1440_v16, %v1524_v25  ;;  %v1450_v47 = vadd.f32 %v2092_v23, %v1027_v18  ;;  %v1444_v32 = vpop.f32.mrb[37].mxu0  ;;  %2209 = vmatpush3.bf16.msra.mxu1 %v2208_v27  ;;  %v624_v27 = vpop.permute.xlu1 %623 }
 0x307   : > { %v1539_v50 = vsel %vm1506_vm6, %v1435_v17, %v1523_v26  ;;  %v1445_v14 = vadd.f32 %v1444_v32, %v1022_v20  ;;  %2210 = vmatprep.subr.bf16.mxu1 %v2438_v57  ;;  %v619_v49 = vpop.permute.xlu0 %618  ;;  %v1077_v20 = vadd.f32 %v3006_v54, %v624_v27 }
 0x308   : > { %v2211_v34 = vpack.c.bf16 %v1540_v29, %v1539_v50  ;;  %vm1509_vm7 = vcmp.ge.f32.partialorder %v1450_v47, 0.0  ;;  %v1526_v36 = vmul.f32 %v3107_v5, %v1450_v47  ;;  %v1072_v23 = vadd.f32 %v3011_v58, %v619_v49 }
 0x309   : > { %vm1508_vm8 = vcmp.ge.f32.partialorder %v1445_v14, 0.0  ;;  %v1525_v38 = vmul.f32 %v3107_v5, %v1445_v14  ;;  %v2095_v28 = vpop.f32.mrb[38].mxu0 }
 0x30a   : > { %v1542_v40 = vsel %vm1509_vm7, %v1450_v47, %v1526_v36  ;;  %v1460_v43 = vadd.f32 %v2095_v28, %v1037_v46  ;;  %v1454_v31 = vpop.f32.mrb[39].mxu0  ;;  %2212 = vmatpush3.bf16.msra.mxu1 %v2211_v34  ;;  %v1553_v28 = vld [vmem:[%s3201_s5] sm:$0x1] }
 0x30b   : > { %v1541_v55 = vsel %vm1508_vm8, %v1445_v14, %v1525_v38  ;;  %v1455_v51 = vadd.f32 %v1454_v31, %v1032_v30  ;;  %2213 = vmatprep.subr.bf16.mxu1 %v2438_v57  ;;  %v1558_v48 = vpop.permute.xlu0 %1557 }
 0x30c   : > { %v2214_v61 = vpack.c.bf16 %v1542_v40, %v1541_v55  ;;  %vm1511_vm9 = vcmp.ge.f32.partialorder %v1460_v43, 0.0  ;;  %v1528_v35 = vmul.f32 %v3107_v5, %v1460_v43  ;;  %v1560_v40 = vlaneseq }
 0x30d   : > { %vm1510_vm10 = vcmp.ge.f32.partialorder %v1455_v51, 0.0  ;;  %v1527_v62 = vmul.f32 %v3107_v5, %v1455_v51  ;;  %v2098_v41 = vpop.f32.mrb[40].mxu0 }
 0x30e   : > { %v1544_v63 = vsel %vm1511_vm9, %v1460_v43, %v1528_v35  ;;  %v1470_v0 = vadd.f32 %v2098_v41, %v1047_v53  ;;  %v1464_v44 = vpop.f32.mrb[41].mxu0  ;;  %2215 = vmatpush3.bf16.msra.mxu1 %v2214_v61  ;;  %v1561_v43 = vshrl.u32 %v1560_v40, 7 }
 0x30f   : > { %v1543_v1 = vsel %vm1510_vm10, %v1455_v51, %v1527_v62  ;;  %v1465_v2 = vadd.f32 %v1464_v44, %v1042_v60  ;;  %2216 = vmatprep.subr.bf16.mxu1 %v2438_v57 }
 0x310   : > { %v2217_v3 = vpack.c.bf16 %v1544_v63, %v1543_v1  ;;  %vm1513_vm11 = vcmp.ge.f32.partialorder %v1470_v0, 0.0  ;;  %v1530_v4 = vmul.f32 %v3107_v5, %v1470_v0  ;;  %v1562_v31 = vsub.s32 0, %v1561_v43 }
 0x311   : > { %vm1512_vm12 = vcmp.ge.f32.partialorder %v1465_v2, 0.0  ;;  %v1529_v6 = vmul.f32 %v3107_v5, %v1465_v2  ;;  %v2101_v9 = vpop.f32.mrb[42].mxu0 }
 0x312   : > { %v1546_v56 = vsel %vm1513_vm11, %v1470_v0, %v1530_v4  ;;  %v1480_v12 = vadd.f32 %v2101_v9, %v1057_v37  ;;  %v1474_v13 = vpop.f32.mrb[43].mxu0  ;;  %2218 = vmatpush3.bf16.msra.mxu1 %v2217_v3 }
 0x313   : > { %v1545_v59 = vsel %vm1512_vm12, %v1465_v2, %v1529_v6  ;;  %v1475_v19 = vadd.f32 %v1474_v13, %v1052_v39  ;;  %2219 = vmatprep.subr.bf16.mxu1 %v2438_v57 }
 0x314   : > { %v2220_v15 = vpack.c.bf16 %v1546_v56, %v1545_v59  ;;  %vm1515_vm13 = vcmp.ge.f32.partialorder %v1480_v12, 0.0  ;;  %v1532_v21 = vmul.f32 %v3107_v5, %v1480_v12 }
 0x315   : > { %vm1514_vm14 = vcmp.ge.f32.partialorder %v1475_v19, 0.0  ;;  %v1531_v16 = vmul.f32 %v3107_v5, %v1475_v19  ;;  %v2104_v22 = vpop.f32.mrb[44].mxu0 }
 0x316   : > { %v1548_v24 = vsel %vm1515_vm13, %v1480_v12, %v1532_v21  ;;  %v1490_v17 = vadd.f32 %v2104_v22, %v1067_v42  ;;  %v1484_v18 = vpop.f32.mrb[45].mxu0  ;;  %2221 = vmatpush3.bf16.msra.mxu1 %v2220_v15 }
 0x317   : > { %v1547_v25 = vsel %vm1514_vm14, %v1475_v19, %v1531_v16  ;;  %v1485_v8 = vadd.f32 %v1484_v18, %v1062_v45  ;;  %2222 = vmatprep.subr.bf16.mxu1 %v2438_v57 }
 0x318   : > { %v2223_v26 = vpack.c.bf16 %v1548_v24, %v1547_v25  ;;  %vm1517_vm15 = vcmp.ge.f32.partialorder %v1490_v17, 0.0  ;;  %v1534_v52 = vmul.f32 %v3107_v5, %v1490_v17 }
 0x319   : > { %vm1516_vm0 = vcmp.ge.f32.partialorder %v1485_v8, 0.0  ;;  %v1533_v11 = vmul.f32 %v3107_v5, %v1485_v8  ;;  %v2107_v29 = vpop.f32.mrb[46].mxu0 }
 0x31a   : > { %v1550_v47 = vsel %vm1517_vm15, %v1490_v17, %v1534_v52  ;;  %v1500_v32 = vadd.f32 %v2107_v29, %v1077_v20  ;;  %v1494_v50 = vpop.f32.mrb[47].mxu0  ;;  %2224 = vmatpush3.bf16.msra.mxu1 %v2223_v26 }
 0x31b   : > { %v1549_v14 = vsel %vm1516_vm0, %v1485_v8, %v1533_v11  ;;  %v1495_v46 = vadd.f32 %v1494_v50, %v1072_v23  ;;  %2225 = vmatprep.subr.bf16.mxu1 %v2438_v57 }
 0x31c   : > { %v2226_v54 = vpack.c.bf16 %v1550_v47, %v1549_v14  ;;  %vm1519_vm1 = vcmp.ge.f32.partialorder %v1500_v32, 0.0  ;;  %v1536_v34 = vmul.f32 %v3107_v5, %v1500_v32 }
 0x31d   : > { %vm1518_vm2 = vcmp.ge.f32.partialorder %v1495_v46, 0.0  ;;  %v1535_v58 = vmul.f32 %v3107_v5, %v1495_v46  ;;  %v1563_v5 = vrot.slane %v1558_v48, %v1562_v31 }
 0x31e   : > { %v1552_v36 = vsel %vm1519_vm1, %v1500_v32, %v1536_v34  ;;  %2227 = vmatpush3.bf16.msra.mxu1 %v2226_v54 }
 0x31f   : > { %v1551_v30 = vsel %vm1518_vm2, %v1495_v46, %v1535_v58  ;;  %2228 = vmatprep.subr.bf16.mxu1 %v2438_v57 }
 0x320   : > { %v2229_v38 = vpack.c.bf16 %v1552_v36, %v1551_v30 }
 0x322   : > { %2230 = vmatpush3.bf16.msra.mxu1 %v2229_v38 }
 0x325   : > { %2141 = vmatmul.mubr.f32.vlgmr.msra.gmra.mrb[32].mxu1 %v1553_v28 }
 0x3f8   : > { %v1630_v55 = vpop.f32.mrb[32].mxu1 }
 0x3f9   : > { %v1631_v51 = vadd.f32 %v1630_v55, %v1563_v5  ;;  %v2142_v57 = vpop.f32.mrb[33].mxu1 }
 0x3fb   : > { %1634 = vst [vmem:[%s284_s18] sm:$0x1] %v1631_v51 }
 0x3fc   : > { %2381 = shalt.err (!%p2378_p2)
}
 0x3fd   : > { %s2382_s9 = scalar_lea.hbm %s3154_s22, 16  ;;  %s2386_s15 = scalar_lea.hbm %s3203_s7, 32 }
 0x3fe   : > { %p2383_p3 = scmp.ne.s32.totalorder %s3154_s22, %s2382_s9  ;;  %p2387_p8 = scmp.lt.u32.totalorder %s3154_s22, %s3203_s7 }
 0x3ff   : > { %p2388_p11 = scmp.lt.u32.totalorder %s2386_s15, %s2382_s9  ;;  %p2390_p10 = scmp.lt.u32.totalorder %s2382_s9, %s3154_s22 }
 0x400   : > { %p2384_p4 = pnand %p2383_p3, %p2523_p5 }
 0x401   : > { %p2389_p9 = por %p2388_p11, %p2387_p8 }
 0x402   : > { %p2385_p7 = pneg %p2384_p4 }
 0x403   : > { %p2391_p12 = por %p2390_p10, %p2389_p9 }
 0x405   : > { %p2392_p13 = pnand %p2391_p12, %p2385_p7 }
 0x407   : > { %2395 = shalt.err (!%p2392_p13)
}
 0x408   : > { %2301 = dma.vmem_to_hbm [thread:$0]  (%p2523_p5), %s3156_s19, 16, %s3154_s22, %s1636_s23  }
 0x409 PF: > { %p2313_p0 = scmp.ge.s32.totalorder %s2434_s29, 2  ;;  %s1660_s18 = sand.u32 1, %s2422_s26  }
 0x40a   : > { %s1661_s20 = scalar_lea.sflag [#allocation4], %s1660_s18 }
 0x40b   : > { %p2308_p1 = pnand %p2313_p0, %p2527_p6 }
 0x40d   : > { %2417 = dma.done.wait (!%p2308_p1), %s1661_s20, 16  }
 0x40e   : > { %2419 = vsyncadd (!%p2308_p1), %s1661_s20, 4294967280  ;;  %p20_p2 = scmp.ge.s32.totalorder %s2510_s8, 4   ;;  %s3207_s26 = smov %s2426_s27 }
 0x40f   : > { %s3208_s27 = smov %s2430_s28  ;;  %s3209_s28 = smov %s2521_s11 }
 0x410   : > { %s3210_s29 = smov %s2510_s8  ;;  %22 = sbr.rel (!%p20_p2) target bundleno = 7 (0x7), region = 89 }
 0x417   :  { %1665 = vsyncpa [#allocation4], 1 }
 0x418   :  { %1667 = vsyncpa [#allocation4 + $0x1], 1 }
 0x419   :  { %1668 = vsyncpa [#allocation5], 1 }
 0x41a   :  { %1670 = vsyncpa [#allocation5 + $0x1], 1 }

</bundles_post_ra>
